<compile_context>
chip_gen: v6e
topology: v6e:2x2x1
jax: 0.10.0
libtpu: 0.0.40
codegen_flags: <defaults>
</compile_context>

<pallas_src>
import jax
import jax.numpy as jnp
import numpy as np
from jax.experimental import pallas as pl
from jax.experimental.pallas import tpu as pltpu


def _sau_kernel(h_ref, l_ref, wh_ref, wl_ref, b_ref, o_ref):
    """One (bn, C, Pt) block: out[i] = Wh @ high[i] + Wl @ low[i] + bias."""
    wh = wh_ref[...]                      # (C, C)  fused W_add + W_high
    wl = wl_ref[...]                      # (C, C)  fused W_add + W_low
    c, pt = o_ref.shape[1], o_ref.shape[2]
    bias_b = jnp.broadcast_to(b_ref[...], (c, pt))   # hoisted: one broadcast / step
    bn = h_ref.shape[0]                   # wrapper guarantees bn <= 8
    for i in range(bn):                   # short static unroll
        acc = jnp.dot(wh, h_ref[i], preferred_element_type=jnp.float32)
        acc = acc + jnp.dot(wl, l_ref[i], preferred_element_type=jnp.float32)
        o_ref[i] = (acc + bias_b).astype(o_ref.dtype)


def _pick_pixel_tile(p_pad, c, itemsize, target_block_bytes):
    """Largest multiple of 128 dividing p_pad whose (C, pt) slab fits the budget."""
    max_pt = max(128, target_block_bytes // max(1, c * itemsize))
    cands = [k * 128 for k in range(1, p_pad // 128 + 1)
             if p_pad % (k * 128) == 0 and k * 128 <= max_pt]
    return cands[-1] if cands else 128


def _pick_images_per_block(n, c, pt, itemsize, target_block_bytes, pixel_blocks):
    """Images per block: bounded unroll (<=8), megacore-friendly grid."""
    cap = max(1, target_block_bytes // max(1, c * pt * itemsize))
    cap = max(1, min(cap, 8, n))
    divisors = [d for d in range(1, cap + 1) if n % d == 0]
    even = [d for d in divisors if ((n // d) * pixel_blocks) % 2 == 0]
    if even:                              # even total steps -> balanced 2-TC split
        return max(even)
    multi = [d for d in divisors if (n // d) * pixel_blocks >= 2]
    return max(multi) if multi else max(divisors)


def sau_forward(high, low, weight, bias, *, target_block_bytes=2 << 20):
    """Pallas TPU SAU forward.

    high, low : (N, C, H, W) float32
    weight    : (C, 3*C, 1, 1) or (C, 3*C)   (Conv2d 1x1 weight)
    bias      : (C,)
    """
    n, c, h, w = high.shape
    assert low.shape == high.shape
    wt = weight.reshape(weight.shape[0], -1)
    assert wt.shape == (c, 3 * c)

    # Fuse the three C-wide weight blocks into two (C, C) operators.
    w_hi = wt[:, :c] + wt[:, c:2 * c]
    w_lo = wt[:, :c] + wt[:, 2 * c:3 * c]
    b_col = bias.reshape(c, 1)

    p = h * w
    hf = high.reshape(n, c, p)
    lf = low.reshape(n, c, p)

    # Pad the pixel axis to a multiple of 128 so stores are lane-dense and the
    # tile budget stays bounded; padded pixels are sliced off at the end.
    p_pad = ((p + 127) // 128) * 128
    if p_pad != p:
        pad = [(0, 0), (0, 0), (0, p_pad - p)]
        hf = jnp.pad(hf, pad)
        lf = jnp.pad(lf, pad)

    itemsize = jnp.dtype(high.dtype).itemsize

    pt = _pick_pixel_tile(p_pad, c, itemsize, target_block_bytes)
    pixel_blocks = p_pad // pt
    bn = _pick_images_per_block(n, c, pt, itemsize, target_block_bytes, pixel_blocks)
    grid = (n // bn, pixel_blocks)

    # Pipelined VMEM footprint: 3 streams (high, low, out) x 2 buffers x block,
    # plus the two resident (C, C) operators and the bias (x2 for buffering).
    block_bytes = bn * c * pt * itemsize
    weight_bytes = (2 * c * c + c) * itemsize
    footprint = 6 * block_bytes + 2 * weight_bytes
    vmem_limit = int(min(48 << 20, max(32 << 20, 2 * footprint)))

    out_flat = pl.pallas_call(
        _sau_kernel,
        out_shape=jax.ShapeDtypeStruct((n, c, p_pad), high.dtype),
        grid_spec=pltpu.PrefetchScalarGridSpec(
            num_scalar_prefetch=0,
            grid=grid,
            in_specs=[
                pl.BlockSpec((bn, c, pt), lambda ib, ip: (ib, 0, ip)),
                pl.BlockSpec((bn, c, pt), lambda ib, ip: (ib, 0, ip)),
                pl.BlockSpec((c, c), lambda ib, ip: (0, 0)),
                pl.BlockSpec((c, c), lambda ib, ip: (0, 0)),
                pl.BlockSpec((c, 1), lambda ib, ip: (0, 0)),
            ],
            out_specs=pl.BlockSpec((bn, c, pt), lambda ib, ip: (ib, 0, ip)),
        ),
        compiler_params=pltpu.CompilerParams(
            dimension_semantics=("parallel", "parallel"),
            vmem_limit_bytes=vmem_limit,
        ),
    )(hf, lf, w_hi, w_lo, b_col)

    if p_pad != p:
        out_flat = out_flat[:, :, :p]
    return out_flat.reshape(n, c, h, w)


# ---------------- pure-JAX reference (mirrors the PyTorch module) ----------------
def sau_ref(high, low, weight, bias):
    concat = jnp.concatenate([high + low, high, low], axis=1)        # (N, 3C, H, W)
    wt = weight.reshape(weight.shape[0], -1)                          # (C, 3C)
    out = jnp.einsum('oc,nchw->nohw', wt, concat,
                     precision=jax.lax.Precision.HIGHEST)
    return out + bias[None, :, None, None]


if __name__ == "__main__":
    key = jax.random.PRNGKey(0)
    k1, k2, k3, k4 = jax.random.split(key, 4)

    N, C, H, W = 2, 4, 16, 16   # nFeat = 4

    high = jax.random.normal(k1, (N, C, H, W), dtype=jnp.float32)
    low = jax.random.normal(k2, (N, C, H, W), dtype=jnp.float32)

    # Conv2d(3C -> C, k=1, bias=True) parameters (PyTorch-style uniform init scale).
    fan_in = 3 * C
    bound = 1.0 / np.sqrt(fan_in)
    weight = jax.random.uniform(k3, (C, 3 * C, 1, 1),
                                minval=-bound, maxval=bound, dtype=jnp.float32)
    bias = jax.random.uniform(k4, (C,), minval=-bound, maxval=bound, dtype=jnp.float32)

    out = jax.block_until_ready(sau_forward(high, low, weight, bias))
    ref = jax.block_until_ready(sau_ref(high, low, weight, bias))

    np.testing.assert_allclose(np.asarray(out), np.asarray(ref), rtol=1e-4, atol=1e-4)
    assert out.shape == (N, C, H, W) and out.dtype == high.dtype

    print("KERNEL_OK")
</pallas_src>

<mosaic_0001>
module attributes {stable_mosaic.version = 11 : i64} {
  func.func @_sau_kernel(%arg0: i32, %arg1: i32, %arg2: memref<1x4x256xf32, #tpu.memory_space<vmem>>, %arg3: memref<1x4x256xf32, #tpu.memory_space<vmem>>, %arg4: memref<4x4xf32, #tpu.memory_space<vmem>>, %arg5: memref<4x4xf32, #tpu.memory_space<vmem>>, %arg6: memref<4x1xf32, #tpu.memory_space<vmem>>, %arg7: memref<1x4x256xf32, #tpu.memory_space<vmem>>) attributes {dimension_semantics = [#tpu.dimension_semantics<parallel>, #tpu.dimension_semantics<parallel>], iteration_bounds = array<i64: 2, 1>, scalar_prefetch = 0 : i64, scratch_operands = 0 : i64, tpu.core_type = #tpu.core_type<tc>, window_params = [{transform_indices = @transform_0, window_bounds = array<i64: 1, 4, 256>}, {transform_indices = @transform_1, window_bounds = array<i64: 1, 4, 256>}, {pipeline_mode = #tpu.pipeline_mode<synchronous>, transform_indices = @transform_2, window_bounds = array<i64: 4, 4>}, {pipeline_mode = #tpu.pipeline_mode<synchronous>, transform_indices = @transform_3, window_bounds = array<i64: 4, 4>}, {pipeline_mode = #tpu.pipeline_mode<synchronous>, transform_indices = @transform_4, window_bounds = array<i64: 4, 1>}, {transform_indices = @transform_5, window_bounds = array<i64: 1, 4, 256>}]} {
    %c0 = arith.constant 0 : index
    %c0_0 = arith.constant 0 : index
    %0 = vector.load %arg4[%c0, %c0_0] : memref<4x4xf32, #tpu.memory_space<vmem>>, vector<4x4xf32>
    %c0_1 = arith.constant 0 : index
    %c0_2 = arith.constant 0 : index
    %1 = vector.load %arg5[%c0_1, %c0_2] : memref<4x4xf32, #tpu.memory_space<vmem>>, vector<4x4xf32>
    %c0_3 = arith.constant 0 : index
    %c0_4 = arith.constant 0 : index
    %2 = vector.load %arg6[%c0_3, %c0_4] : memref<4x1xf32, #tpu.memory_space<vmem>>, vector<4x1xf32>
    %3 = vector.shape_cast %2 : vector<4x1xf32> to vector<4x1xf32>
    %4 = vector.broadcast %3 : vector<4x1xf32> to vector<4x256xf32>
    %c0_5 = arith.constant 0 : index
    %c0_6 = arith.constant 0 : index
    %c0_7 = arith.constant 0 : index
    %5 = vector.load %arg2[%c0_5, %c0_6, %c0_7] : memref<1x4x256xf32, #tpu.memory_space<vmem>>, vector<1x4x256xf32>
    %6 = vector.shape_cast %5 : vector<1x4x256xf32> to vector<4x256xf32>
    %cst = arith.constant dense<0.000000e+00> : vector<4x256xf32>
    %7 = tpu.matmul %0, %6, %cst {dimension_numbers = #tpu.dot_dimension_numbers<[1], [0], [0], [1], [0, 0, 1, 1], [], []>} : vector<4x4xf32>, vector<4x256xf32>, vector<4x256xf32> -> vector<4x256xf32>
    %c0_8 = arith.constant 0 : index
    %c0_9 = arith.constant 0 : index
    %c0_10 = arith.constant 0 : index
    %8 = vector.load %arg3[%c0_8, %c0_9, %c0_10] : memref<1x4x256xf32, #tpu.memory_space<vmem>>, vector<1x4x256xf32>
    %9 = vector.shape_cast %8 : vector<1x4x256xf32> to vector<4x256xf32>
    %cst_11 = arith.constant dense<0.000000e+00> : vector<4x256xf32>
    %10 = tpu.matmul %1, %9, %cst_11 {dimension_numbers = #tpu.dot_dimension_numbers<[1], [0], [0], [1], [0, 0, 1, 1], [], []>} : vector<4x4xf32>, vector<4x256xf32>, vector<4x256xf32> -> vector<4x256xf32>
    %11 = arith.addf %7, %10 : vector<4x256xf32>
    %12 = arith.addf %11, %4 : vector<4x256xf32>
    %c0_12 = arith.constant 0 : index
    %c0_13 = arith.constant 0 : index
    %c0_14 = arith.constant 0 : index
    %13 = vector.load %arg7[%c0_12, %c0_13, %c0_14] : memref<1x4x256xf32, #tpu.memory_space<vmem>>, vector<1x4x256xf32>
    %14 = vector.shape_cast %13 : vector<1x4x256xf32> to vector<4x256xf32>
    %15 = vector.shape_cast %12 : vector<4x256xf32> to vector<1x4x256xf32>
    tpu.vector_store %arg7[%c0_12, %c0_13, %c0_14], %15 {strides = array<i32>} : memref<1x4x256xf32, #tpu.memory_space<vmem>>, vector<1x4x256xf32>,
    return
  }
  func.func @transform_0(%arg0: i32, %arg1: i32) -> (i32, i32, i32) {
    %c0_i32 = arith.constant 0 : i32
    %c0_i32_0 = arith.constant 0 : i32
    return %arg0, %c0_i32, %arg1 : i32, i32, i32
  }
  func.func @transform_1(%arg0: i32, %arg1: i32) -> (i32, i32, i32) {
    %c0_i32 = arith.constant 0 : i32
    %c0_i32_0 = arith.constant 0 : i32
    return %arg0, %c0_i32, %arg1 : i32, i32, i32
  }
  func.func @transform_2(%arg0: i32, %arg1: i32) -> (i32, i32) {
    %c0_i32 = arith.constant 0 : i32
    %c0_i32_0 = arith.constant 0 : i32
    %c0_i32_1 = arith.constant 0 : i32
    return %c0_i32, %c0_i32_0 : i32, i32
  }
  func.func @transform_3(%arg0: i32, %arg1: i32) -> (i32, i32) {
    %c0_i32 = arith.constant 0 : i32
    %c0_i32_0 = arith.constant 0 : i32
    %c0_i32_1 = arith.constant 0 : i32
    return %c0_i32, %c0_i32_0 : i32, i32
  }
  func.func @transform_4(%arg0: i32, %arg1: i32) -> (i32, i32) {
    %c0_i32 = arith.constant 0 : i32
    %c0_i32_0 = arith.constant 0 : i32
    %c0_i32_1 = arith.constant 0 : i32
    return %c0_i32, %c0_i32_0 : i32, i32
  }
  func.func @transform_5(%arg0: i32, %arg1: i32) -> (i32, i32, i32) {
    %c0_i32 = arith.constant 0 : i32
    %c0_i32_0 = arith.constant 0 : i32
    return %arg0, %c0_i32, %arg1 : i32, i32, i32
  }
}

</mosaic_0001>

<bundles_post_ra>
// kernel: tpu_custom_call.1
= control target key start
LH: loop header
LB: loop body
LE: loop exit
PB: predicated region body
PF: predicated region fallthrough
CT: control target
= control target key end

     0   :  { %s1062_s0 = inlined_call_operand.hbm [shape: f32[2,4,256], index: 0, kind: input, shape index: {}]   ;;  %s1063_s1 = inlined_call_operand.hbm [shape: f32[2,4,256], index: 1, kind: input, shape index: {}]   ;;  %s1064_s2 = inlined_call_operand.vmem [shape: f32[4,4], index: 2, kind: input, shape index: {}]   ;;  %s1065_s3 = inlined_call_operand.vmem [shape: f32[4,4], index: 3, kind: input, shape index: {}]   ;;  %s1066_s4 = inlined_call_operand.vmem [shape: f32[4,1], index: 4, kind: input, shape index: {}]   ;;  %s1067_s5 = inlined_call_operand.hbm [shape: f32[2,4,256], index: 5, kind: output, shape index: {}]  }
   0x1   :  { %1068 = sst [smem:[#allocation11_spill]] %s1062_s0 }
   0x2   :  { %10 = vsyncpa [#allocation3], 0 }
   0x3   :  { %12 = vsyncpa [#allocation3 + $0x1], 0 }
   0x4   :  { %13 = vsyncpa [#allocation6], 0 }
   0x5   :  { %15 = vsyncpa [#allocation6 + $0x1], 0 }
   0x6   :  { %16 = vsyncpa [#allocation4], 0 }
   0x7   :  { %18 = vsyncpa [#allocation4 + $0x1], 0  ;;  %s887_s18 = smov 0   ;;  %s889_s19 = smov 0  }
   0x8   :  { %s891_s20 = smov 0   ;;  %s893_s21 = smov 0  }
   0x9   :  { %s895_s22 = smov 0   ;;  %s897_s23 = smov 0  }
   0xa LB: > { %s610_s24 = sadd.s32 4294967295, %s850_s23   ;;  %s611_s25 = sadd.s32 4294967294, %s850_s23   ;;  %s850_s23 = sphi %s897_s23, %s24_s23   ;;  %s846_s22 = sphi %s895_s22, %s1081_s22   ;;  %s842_s21 = sphi %s893_s21, %s1080_s21   ;;  %s838_s20 = sphi %s891_s20, %s1079_s20   ;;  %s834_s19 = sphi %s889_s19, %s1078_s19   ;;  %s830_s18 = sphi %s887_s18, %s1077_s18  }
   0xb   : > { %s36_s26 = sadd.s32 1, %s846_s22  ;;  %s45_s27 = sadd.s32 1, %s838_s20 }
   0xc   : > { %p38_p0 = scmp.ge.s32.totalorder %s36_s26, 2  ;;  %p52_p1 = scmp.ne.s32.totalorder %s838_s20, %s834_s19 }
   0xd   : > { %p53_p2 = scmp.eq.s32.totalorder %s850_s23, 0  ;;  %p58_p3 = scmp.ne.s32.totalorder %s834_s19, %s830_s18 }
   0xe   : > { %s1083_s26 = smov (%p38_p0, %s36_s26), 0  ;;  %p59_p5 = scmp.eq.s32.totalorder %s610_s24, 0 }
   0xf   : > { %p928_p4 = por %p53_p2, %p52_p1  ;;  %s40_s29 = ssub.s32 %s846_s22, %s1083_s26 }
  0x10   : > { %p175_p6 = scmp.eq.s32.totalorder %s610_s24, 1  ;;  %p43_p7 = scmp.eq.s32.totalorder %s40_s29, 0 }
  0x11   : > { %p934_p8 = por %p59_p5, %p58_p3  ;;  %p181_p10 = scmp.eq.s32.totalorder %s611_s25, 1 }
  0x12   : > { %p938_p9 = por %p175_p6, %p52_p1  ;;  %p655_p13 = scmp.lt.s32.totalorder %s850_s23, 2 }
  0x13   : > { %s943_s7 = scalar_select %p43_p7, %s838_s20, %s45_s27  }
  0x14   : > { %p945_p11 = por %p181_p10, %p58_p3  ;;  %s952_s9 = sand.u32 1, %s838_s20  }
  0x15   : > { %s614_s10 = sshll.u32 %s952_s9, 3  ;;  %s635_s11 = sshll.u32 %s846_s22, 7 }
  0x16   : > { %s1073_s0 = sld [smem:[#allocation11_spill]]  ;;  %s214_s15 = scalar_lea.vmem [#allocation2], %s614_s10 }
  0x17   : > { %s224_s16 = sshll.u32 %s214_s15, 4  ;;  %p961_p0 = pnand %p655_p13, %p928_p4  ;;  %s225_s16 = int_to_ptr.vmem [resolvable:$true] %s224_s16 }
  0x18   : > { %p620_p1 = scmp.ge.s32.totalorder %s850_s23, 1  ;;  %p250_p2 = scmp.lt.s32.totalorder %s850_s23, 3 }
  0x19   : > { %s211_s24 = scalar_lea.sflag [#allocation3], %s952_s9  ;;  %p712_p3 = pneg %p961_p0 }
  0x1a   : > { %s723_s25 = scalar_lea.vmem %s225_s16, 128  ;;  %s852_s27 = smov [#allocation2]  }
  0x1b   : > { %p724_p5 = scmp.ne.s32.totalorder %s225_s16, %s723_s25  ;;  %s728_s29 = sshll.u32 %s852_s27, 4  ;;  %s729_s29 = int_to_ptr.vmem [resolvable:$false] %s728_s29 }
  0x1c   : > { %s222_s14 = scalar_lea.hbm %s1073_s0, %s635_s11  ;;  %s730_s28 = scalar_lea.vmem %s729_s29, 256 }
  0x1d   : > { %p726_p6 = pnand %p724_p5, %p712_p3  ;;  %p731_p4 = scmp.lt.s32.totalorder %s225_s16, %s729_s29 }
  0x1e   : > { %p732_p10 = scmp.lt.s32.totalorder %s730_s28, %s723_s25 }
  0x1f   : > { %p727_p7 = pneg %p726_p6 }
  0x20   : > { %p733_p13 = por %p732_p10, %p731_p4 }
  0x22   : > { %p734_p12 = pnand %p733_p13, %p727_p7 }
  0x24   : > { %737 = shalt.err (!%p734_p12)
}
  0x25   : > { %647 = dma.hbm_to_vmem [thread:$0]  (!%p961_p0), %s222_s14, 128, %s225_s16, %s211_s24  }
  0x26   : > { %p979_p5 = pnand %p620_p1, %p250_p2  ;;  %s243_s25 = scalar_lea.hbm %s1063_s1, %s635_s11 }
  0x27   : > { %s235_s27 = scalar_lea.vmem [#allocation5], %s614_s10  ;;  %s232_s28 = scalar_lea.sflag [#allocation6], %s952_s9 }
  0x28   : > { %s245_s29 = sshll.u32 %s235_s27, 4  ;;  %s853_s14 = smov [#allocation5]   ;;  %s246_s29 = int_to_ptr.vmem [resolvable:$true] %s245_s29 }
  0x29   : > { %s751_s0 = scalar_lea.vmem %s246_s29, 128  ;;  %s756_s16 = sshll.u32 %s853_s14, 4  ;;  %s757_s16 = int_to_ptr.vmem [resolvable:$false] %s756_s16 }
  0x2a   : > { %p752_p12 = scmp.ne.s32.totalorder %s246_s29, %s751_s0  ;;  %s758_s24 = scalar_lea.vmem %s757_s16, 256 }
  0x2b   : > { %p759_p1 = scmp.lt.s32.totalorder %s246_s29, %s757_s16  ;;  %p760_p2 = scmp.lt.s32.totalorder %s758_s24, %s751_s0 }
  0x2c   : > { %p754_p6 = pnand %p752_p12, %p712_p3 }
  0x2d   : > { %p761_p4 = por %p760_p2, %p759_p1 }
  0x2e   : > { %p755_p7 = pneg %p754_p6 }
  0x30   : > { %p762_p10 = pnand %p761_p4, %p755_p7 }
  0x32   : > { %765 = shalt.err (!%p762_p10)
}
  0x33   : > { %650 = dma.hbm_to_vmem [thread:$0]  (!%p961_p0), %s243_s25, 128, %s246_s29, %s232_s28  }
  0x34   : > { %254 = sbr.rel (%p979_p5) target bundleno = 280 (0x118), region = 40  ;;  %s995_s9 = sand.u32 (!%p979_p5), 1, %s834_s19  }
  0x35   : > { %s998_s10 = sshll.u32 (!%p979_p5), %s995_s9, 3  ;;  %s257_s11 = scalar_lea.sflag (!%p979_p5), [#allocation3], %s995_s9 }
  0x36   : > { %s260_s0 = scalar_lea.vmem (!%p979_p5), [#allocation2], %s998_s10 }
  0x39   : > { %817 = dma.done.wait (%p934_p8), %s257_s11, 128  }
  0x3a   : > { %819 = vsyncadd (%p934_p8), %s257_s11, 4294967168  ;;  %s266_s17 = scalar_lea.sflag [#allocation6], %s995_s9  ;;  %s269_s12 = scalar_lea.vmem [#allocation5], %s998_s10 }
  0x3b   : > { %821 = dma.done.wait (%p934_p8), %s266_s17, 128  }
  0x3c   : > { %823 = vsyncadd (%p934_p8), %s266_s17, 4294967168  ;;  %v854_v0 = vmov 0.0   ;;  %v855_v1 = vmov 0   ;;  %v313_v2 = vld [vmem:[%s269_s12] sm:$0xff]  ;;  %vm320_vm0 = vcmask 1043456   ;;  %v312_v3 = vld [vmem:[%s260_s0] sm:$0xff] }
  0x3d   : > { %389 = vmatprep.mubr.f32.mxu0 %v854_v0  ;;  %469 = vmatprep.mubr.f32.mxu1 %v854_v0  ;;  %v315_v4 = vcombine.high %v313_v2, %v313_v2  ;;  %v397_v5 = vcombine.high %v312_v3, %v312_v3  ;;  %v306_v6 = vld [vmem:[%s1066_s4] sm:$0xf]  ;;  %vm316_vm1 = vcmask 31744   ;;  %s637_s28 = sshll.u32 %s842_s21, 7  ;;  %s300_s14 = scalar_lea.vmem [#allocation7], %s998_s10 }
  0x3e   : > { %707 = vset.pattern.permute.xlu0 %v855_v1  ;;  %v305_v7 = vld [vmem:[%s1065_s3] sm:$0xf]  ;;  %s500_s16 = sshll.u32 %s300_s14, 4  ;;  %s498_s0 = scalar_lea.hbm %s1067_s5, %s637_s28  ;;  %s501_s16 = int_to_ptr.vmem [resolvable:$true] %s500_s16 }
  0x3f   : > { %v304_v8 = vld [vmem:[%s1064_s2] sm:$0xf]  ;;  %309 = vperm.xlu0 %707, %v306_v6   ;;  %624 = vmatprep.subr.msk.mxu0 %vm320_vm0, %v315_v4  ;;  %s484_s17 = scalar_lea.sflag [#allocation4], %s995_s9  ;;  %s766_s12 = scalar_lea.vmem %s501_s16, 128 }
  0x40   : > { %627 = vmatprep.subr.msk.mxu1 %vm320_vm0, %v397_v5  ;;  %625 = vmatpush1.msk.msra.mxu0 %vm320_vm0, %v313_v2  ;;  %p767_p8 = scmp.ne.s32.totalorder %s501_s16, %s766_s12  ;;  %s856_s13 = smov [#allocation7]  }
  0x41   : > { %628 = vmatpush1.msk.msra.mxu1 %vm320_vm0, %v312_v3  ;;  %626 = vmatmul.mubr.msk.f32.vlgmr.msra.gmra.mxu0 %vm316_vm1, %v305_v7  ;;  %s770_s15 = sshll.u32 %s856_s13, 4  ;;  %s771_s15 = int_to_ptr.vmem [resolvable:$false] %s770_s15 }
  0x42   : > { %629 = vmatmul.mubr.msk.f32.vlgmr.msra.gmra.mxu1 %vm316_vm1, %v304_v8  ;;  %p768_p0 = pnand %p767_p8, %p938_p9  ;;  %s772_s21 = scalar_lea.vmem %s771_s15, 256 }
  0x43   : > { %p773_p13 = scmp.lt.s32.totalorder %s501_s16, %s771_s15  ;;  %p774_p5 = scmp.lt.s32.totalorder %s772_s21, %s766_s12 }
  0x44   : > { %p769_p3 = pneg %p768_p0 }
  0x45   : > { %p775_p12 = por %p774_p5, %p773_p13 }
  0x47   : > { %p776_p6 = pnand %p775_p12, %p769_p3 }
  0xba   : > { %v310_v12 = vpop.permute.xlu0 %309 }
 0x101   : > { %v391_v9 = vpop.f32.mrf.mxu0 }
 0x102   : > { %v471_v10 = vpop.f32.mrf.mxu1 }
 0x103   : > { %v472_v11 = vadd.f32 %v471_v10, %v391_v9  ;;  %v393_v13 = vpop.f32.mrf.mxu0 }
 0x104   : > { %v473_v14 = vpop.f32.mrf.mxu1 }
 0x105   : > { %v474_v15 = vadd.f32 %v473_v14, %v393_v13  ;;  %v476_v16 = vadd.f32 %v472_v11, %v310_v12 }
 0x107   : > { %v477_v17 = vadd.f32 %v474_v15, %v310_v12 }
 0x109   : > { %v480_v18 = vcombine.low %v476_v16, %v477_v17 }
 0x10b   : > { %482 = vst [vmem:[%s300_s14] sm:$0xff] %v480_v18 }
 0x10c   : > { %779 = shalt.err (!%p776_p6)
}
 0x10d   : > { %s780_s10 = scalar_lea.hbm %s498_s0, 128  ;;  %s784_s27 = scalar_lea.hbm %s1067_s5, 256 }
 0x10e   : > { %p781_p7 = scmp.ne.s32.totalorder %s498_s0, %s780_s10  ;;  %p785_p4 = scmp.lt.s32.totalorder %s498_s0, %s1067_s5 }
 0x10f   : > { %p786_p10 = scmp.lt.s32.totalorder %s784_s27, %s780_s10 }
 0x110   : > { %p782_p1 = pnand %p781_p7, %p938_p9 }
 0x111   : > { %p787_p8 = por %p786_p10, %p785_p4 }
 0x112   : > { %p783_p2 = pneg %p782_p1 }
 0x114   : > { %p788_p0 = pnand %p787_p8, %p783_p2 }
 0x116   : > { %791 = shalt.err (!%p788_p0)
}
 0x117   : > { %642 = dma.vmem_to_hbm [thread:$0]  (%p938_p9), %s501_s16, 128, %s498_s0, %s484_s17  }
 0x118 PF: > { %s512_s28 = sand.u32 1, %s830_s18   ;;  %p1076_p3 = scmp.ge.s32.totalorder %s850_s23, 2 }
 0x119   : > { %s513_s14 = scalar_lea.sflag [#allocation4], %s512_s28 }
 0x11a   : > { %p652_p13 = pnand %p1076_p3, %p945_p11 }
 0x11c   : > { %p653_p5 = pneg %p652_p13 }
 0x11e   : > { %825 = dma.done.wait (%p653_p5), %s513_s14, 128  }
 0x11f   : > { %827 = vsyncadd (%p653_p5), %s513_s14, 4294967168  ;;  %s24_s23 = sadd.s32 1, %s850_s23   ;;  %s1077_s18 = smov %s834_s19 }
 0x120   : > { %p21_p12 = scmp.ge.s32.totalorder %s24_s23, 4   ;;  %s1078_s19 = smov %s838_s20 }
 0x121   : > { %s1079_s20 = smov %s943_s7  ;;  %s1080_s21 = smov %s846_s22 }
 0x122   : > { %s1081_s22 = smov %s1083_s26  ;;  %23 = sbr.rel (!%p21_p12) target bundleno = 10 (0xa), region = 98 }
 0x127   :  { %518 = vsyncpa [#allocation3], 1 }
 0x128   :  { %520 = vsyncpa [#allocation3 + $0x1], 1 }
 0x129   :  { %521 = vsyncpa [#allocation6], 1 }
 0x12a   :  { %523 = vsyncpa [#allocation6 + $0x1], 1 }
 0x12b   :  { %524 = vsyncpa [#allocation4], 1 }
 0x12c   :  { %526 = vsyncpa [#allocation4 + $0x1], 1 }

</bundles_post_ra>
